<compile_context>
chip_gen: v7x
topology: tpu7x:2x2x1
jax: 0.10.0
libtpu: 0.0.40
codegen_flags: <defaults>
</compile_context>

<pallas_src>
import math
import functools

import jax
import jax.numpy as jnp
import numpy as np
from jax import lax
from jax.experimental import pallas as pl
from jax.experimental.pallas import tpu as pltpu


# Conservative VMEM budgets: safe on v7x (64 MiB physical, 32 MiB default
# scoped) while still being a raise over v5e's 16 MiB default scoped VMEM.
_RESIDENT_WEIGHT_BYTES = 8 * 1024 * 1024
_VMEM_BUDGET_BYTES = 40 * 1024 * 1024
_VMEM_LIMIT_BYTES = 48 * 1024 * 1024


def _round_up(x, m):
    return ((x + m - 1) // m) * m


# ----------------------------------------------------------------------------
# GEMM kernels:  y = x @ W     x:(M,K)  W:(K,N)  ->  y:(M,N)
# ----------------------------------------------------------------------------
def _matmul_resident_kernel(x_ref, w_ref, o_ref):
    # Whole weight is VMEM-resident (index_map constant across the grid);
    # each step is a single full-K matmul — no accumulator scratch needed.
    o_ref[...] = jnp.dot(
        x_ref[...], w_ref[...], preferred_element_type=jnp.float32
    ).astype(o_ref.dtype)


def _matmul_tiled_kernel(x_ref, w_ref, o_ref, acc_ref):
    @pl.when(pl.program_id(2) == 0)
    def _():
        acc_ref[...] = jnp.zeros_like(acc_ref)

    acc_ref[...] += jnp.dot(
        x_ref[...], w_ref[...], preferred_element_type=jnp.float32
    )

    @pl.when(pl.program_id(2) == pl.num_programs(2) - 1)
    def _():
        o_ref[...] = acc_ref[...].astype(o_ref.dtype)


def linear(x2d, w, *, tm=512, tk=512, tn=512):
    """y = x2d @ w with a Pallas GEMM; picks weight-resident or tiled path."""
    M, K = x2d.shape
    K2, N = w.shape
    assert K == K2
    out_dtype = x2d.dtype
    itemsize = jnp.dtype(out_dtype).itemsize

    # ---------------- Weight-resident path (small/medium weights) -----------
    if K * N * itemsize <= _RESIDENT_WEIGHT_BYTES:
        tm_eff = min(tm, _round_up(M, 8))
        # Shrink the M tile until the double-buffered working set fits.
        while tm_eff > 8 and (
            2 * (tm_eff * K + K * N + tm_eff * N) * itemsize > _VMEM_BUDGET_BYTES
        ):
            tm_eff = max(8, tm_eff // 2)
        Mp = _round_up(M, tm_eff)
        xp = x2d if Mp == M else jnp.pad(x2d, ((0, Mp - M), (0, 0)))
        out = pl.pallas_call(
            _matmul_resident_kernel,
            out_shape=jax.ShapeDtypeStruct((Mp, N), out_dtype),
            grid=(Mp // tm_eff,),
            in_specs=[
                pl.BlockSpec((tm_eff, K), lambda i: (i, 0)),
                # Constant block index -> weight fetched from HBM once,
                # stays resident across all M tiles.
                pl.BlockSpec((K, N), lambda i: (0, 0)),
            ],
            out_specs=pl.BlockSpec((tm_eff, N), lambda i: (i, 0)),
            compiler_params=pltpu.CompilerParams(
                dimension_semantics=("parallel",),
                vmem_limit_bytes=_VMEM_LIMIT_BYTES,
            ),
        )(xp, w)
        return out if Mp == M else out[:M]

    # ---------------- General tiled path (large weights) --------------------
    tm_eff = min(tm, _round_up(M, 8))
    tk_eff = min(tk, _round_up(K, 128))
    tn_eff = min(tn, _round_up(N, 128))
    Mp = _round_up(M, tm_eff)
    Kp = _round_up(K, tk_eff)
    Np = _round_up(N, tn_eff)
    # Pad awkward shapes to tile multiples (zero K padding is matmul-neutral)
    # instead of falling back to unbounded full-extent blocks.
    xp = x2d if (Mp == M and Kp == K) else jnp.pad(x2d, ((0, Mp - M), (0, Kp - K)))
    wp = w if (Kp == K and Np == N) else jnp.pad(w, ((0, Kp - K), (0, Np - N)))
    out = pl.pallas_call(
        _matmul_tiled_kernel,
        out_shape=jax.ShapeDtypeStruct((Mp, Np), out_dtype),
        grid_spec=pltpu.PrefetchScalarGridSpec(
            num_scalar_prefetch=0,
            grid=(Mp // tm_eff, Np // tn_eff, Kp // tk_eff),
            in_specs=[
                pl.BlockSpec((tm_eff, tk_eff), lambda i, j, k: (i, k)),
                pl.BlockSpec((tk_eff, tn_eff), lambda i, j, k: (k, j)),
            ],
            out_specs=pl.BlockSpec((tm_eff, tn_eff), lambda i, j, k: (i, j)),
            scratch_shapes=[pltpu.VMEM((tm_eff, tn_eff), jnp.float32)],
        ),
        compiler_params=pltpu.CompilerParams(
            dimension_semantics=("parallel", "parallel", "arbitrary"),
            vmem_limit_bytes=_VMEM_LIMIT_BYTES,
        ),
    )(xp, wp)
    return out if (Mp == M and Np == N) else out[:M, :N]


# ----------------------------------------------------------------------------
# Scaled dot-product attention kernel.
# Blocks: q/o = (1, tq, D), k/v = (1, Skv, D).  Heads live contiguously along
# the lane (D) axis; each head's output is written straight into its lane
# range of o_ref (no list-then-concatenate, no relayout).
# ----------------------------------------------------------------------------
def _attn_kernel(q_ref, k_ref, v_ref, o_ref, *, n_heads, head_dim, inv_scale):
    # Fold the (intentional) 1/sqrt(embed_dim) scale into Q — much cheaper
    # than scaling the (tq, Skv) score matrix per head.
    q = q_ref[0] * inv_scale           # (tq, D)
    k = k_ref[0]                        # (Skv, D)
    v = v_ref[0]                        # (Skv, D)

    for h in range(n_heads):            # static unroll over heads
        lo = h * head_dim
        qh = q[:, lo:lo + head_dim]     # (tq, Dh)
        kh = k[:, lo:lo + head_dim]     # (Skv, Dh)
        vh = v[:, lo:lo + head_dim]     # (Skv, Dh)

        # q @ k^T: contract last dims directly (no materialized transpose).
        s = lax.dot_general(
            qh, kh, (((1,), (1,)), ((), ())), preferred_element_type=jnp.float32
        )                               # (tq, Skv), already scaled via q

        # Numerically stable softmax over the key axis.
        m = jnp.max(s, axis=-1, keepdims=True)
        e = jnp.exp(s - m)
        l = jnp.sum(e, axis=-1, keepdims=True)
        acc = jnp.dot(e.astype(vh.dtype), vh, preferred_element_type=jnp.float32)

        # Write this head's normalized result directly into its lane range;
        # frees the f32 accumulator immediately (no concat, no spill pressure).
        o_ref[0, :, lo:lo + head_dim] = (acc / l).astype(o_ref.dtype)


def _choose_tq(Sq, Skv, D, itemsize):
    """Largest query tile (divisor of Sq, multiple of 8) within VMEM budget."""
    def fits(t):
        blocks = 2 * (2 * t * D + 2 * Skv * D) * itemsize   # q,o,k,v double-buffered
        live = t * Skv * 4 + t * D * 4                      # f32 score tile + head acc
        return blocks + live <= _VMEM_BUDGET_BYTES

    divisors = [c for c in (1024, 512, 256, 128, 64, 32, 16, 8)
                if c <= Sq and Sq % c == 0]
    for c in divisors:
        if fits(c):
            return c
    if divisors:
        return divisors[-1]
    return Sq  # full-extent query block (always layout-legal for 3-D arrays)


def scaled_dot_product_attention(q_src, k_src, v_src, *, n_heads, head_dim,
                                 embed_dim):
    """Each *_src is (array_3d, lane_block_index).

    array_3d is (B, seq, n_cols*D); lane_block_index selects which D-wide
    column block holds this operand.  For the fused self-attention path the
    same (B, S, 3D) qkv array is passed three times with blocks 0/1/2 — no
    wrapper-side slicing, no extra HBM copies.
    """
    q_arr, q_col = q_src
    k_arr, k_col = k_src
    v_arr, v_col = v_src
    B, Sq, _ = q_arr.shape
    Skv = k_arr.shape[1]
    D = n_heads * head_dim
    inv_scale = 1.0 / math.sqrt(embed_dim)   # NOTE: embed_dim (module quirk)
    itemsize = jnp.dtype(q_arr.dtype).itemsize

    tq = _choose_tq(Sq, Skv, D, itemsize)
    if Sq % tq != 0:
        tq = Sq
    n_q_tiles = Sq // tq

    kernel = functools.partial(
        _attn_kernel, n_heads=n_heads, head_dim=head_dim, inv_scale=inv_scale
    )

    # K/V index_maps are independent of the query-tile axis -> resident across
    # query tiles of the same batch element (no re-DMA).
    def q_map(b, i, c=q_col):
        return (b, i, c)

    def k_map(b, i, c=k_col):
        return (b, 0, c)

    def v_map(b, i, c=v_col):
        return (b, 0, c)

    return pl.pallas_call(
        kernel,
        out_shape=jax.ShapeDtypeStruct((B, Sq, D), q_arr.dtype),
        grid=(B, n_q_tiles),
        in_specs=[
            pl.BlockSpec((1, tq, D), q_map),
            pl.BlockSpec((1, Skv, D), k_map),
            pl.BlockSpec((1, Skv, D), v_map),
        ],
        out_specs=pl.BlockSpec((1, tq, D), lambda b, i: (b, i, 0)),
        compiler_params=pltpu.CompilerParams(
            # Both axes parallel: B>=2 and/or multiple query tiles keep both
            # v7x TensorCores busy.
            dimension_semantics=("parallel", "parallel"),
            vmem_limit_bytes=_VMEM_LIMIT_BYTES,
        ),
    )(q_arr, k_arr, v_arr)


# ----------------------------------------------------------------------------
# Parameters (weights stored as (in, out) = W.T of nn.Linear; fused QKV weight
# built once here, not per forward call).
# ----------------------------------------------------------------------------
def make_mha_params(rng, embed_dim):
    k1, k2, k3, k4 = jax.random.split(rng, 4)
    bound = 1.0 / math.sqrt(embed_dim)
    wq = jax.random.uniform(k1, (embed_dim, embed_dim), jnp.float32, -bound, bound)
    wk = jax.random.uniform(k2, (embed_dim, embed_dim), jnp.float32, -bound, bound)
    wv = jax.random.uniform(k3, (embed_dim, embed_dim), jnp.float32, -bound, bound)
    wo = jax.random.uniform(k4, (embed_dim, embed_dim), jnp.float32, -bound, bound)
    return {
        "wq": wq, "wk": wk, "wv": wv, "wo": wo,
        "w_qkv": jnp.concatenate([wq, wk, wv], axis=1),   # (D, 3D), built once
    }


# ----------------------------------------------------------------------------
# Multi-head attention forward (mirrors MultiHeadAttention.forward, mask=None)
# ----------------------------------------------------------------------------
def multi_head_attention(key, query, value, params, n_heads, fuse_qkv=None):
    """key/value: (B, S, D), query: (B, Sq, D) -> (B, Sq, D).

    fuse_qkv=True (self-attention on `query`) runs a single (D,3D) projection
    GEMM and feeds the fused output straight into the attention kernel.  The
    default identity check fails under jit with separately-traced args; pass
    fuse_qkv explicitly there.
    """
    B, S, D = key.shape
    Sq = query.shape[1]
    assert D % n_heads == 0
    Dh = D // n_heads

    if fuse_qkv is None:
        fuse_qkv = (key is query) and (key is value) and ("w_qkv" in params)

    if fuse_qkv:
        # One fused GEMM: activation read from HBM once, wide MXU-friendly N.
        qkv2d = linear(query.reshape(B * Sq, D), params["w_qkv"])   # (B*Sq, 3D)
        qkv = qkv2d.reshape(B, Sq, 3 * D)
        if D % 128 == 0:
            # Feed the fused array directly; column blocks 0/1/2 select Q/K/V.
            concat = scaled_dot_product_attention(
                (qkv, 0), (qkv, 1), (qkv, 2),
                n_heads=n_heads, head_dim=Dh, embed_dim=D)
        else:
            # TODO(synk): D not a multiple of 128 -> D-wide column blocks of a
            # (.., 3D) array violate the (8,128) layout rule; fall back to
            # slicing (extra HBM traffic) rather than fused attention input.
            q3 = qkv[..., :D]
            k3 = qkv[..., D:2 * D]
            v3 = qkv[..., 2 * D:]
            concat = scaled_dot_product_attention(
                (q3, 0), (k3, 0), (v3, 0),
                n_heads=n_heads, head_dim=Dh, embed_dim=D)
    else:
        q3 = linear(query.reshape(B * Sq, D), params["wq"]).reshape(B, Sq, D)
        k3 = linear(key.reshape(B * S, D), params["wk"]).reshape(B, S, D)
        v3 = linear(value.reshape(B * S, D), params["wv"]).reshape(B, S, D)
        concat = scaled_dot_product_attention(
            (q3, 0), (k3, 0), (v3, 0),
            n_heads=n_heads, head_dim=Dh, embed_dim=D)

    out = linear(concat.reshape(B * Sq, D), params["wo"])
    return out.reshape(B, Sq, D)


# ----------------------------------------------------------------------------
# Pure-JAX reference (for correctness check).
# ----------------------------------------------------------------------------
def reference_mha(key, query, value, params, n_heads):
    B, S, D = key.shape
    Sq = query.shape[1]
    Dh = D // n_heads
    k = key @ params["wk"]
    q = query @ params["wq"]
    v = value @ params["wv"]
    k = k.reshape(B, S, n_heads, Dh).transpose(0, 2, 1, 3)
    q = q.reshape(B, Sq, n_heads, Dh).transpose(0, 2, 1, 3)
    v = v.reshape(B, S, n_heads, Dh).transpose(0, 2, 1, 3)
    logits = jnp.einsum("bhqd,bhkd->bhqk", q, k) / math.sqrt(D)
    p = jax.nn.softmax(logits, axis=-1)
    o = jnp.einsum("bhqk,bhkd->bhqd", p, v)
    o = o.transpose(0, 2, 1, 3).reshape(B, Sq, D)
    return o @ params["wo"]


if __name__ == "__main__":
    # Small shapes consistent with the module (default embedding_dim=512,
    # n_heads=8 scaled down; D kept a multiple of 128 so the fused-QKV column
    # blocks are layout-legal).
    batch = 2
    seq = 8
    embed_dim = 128
    n_heads = 4

    root = jax.random.PRNGKey(0)
    kx1, kx2, kx3, kparams = jax.random.split(root, 4)
    params = make_mha_params(kparams, embed_dim)

    key_in = jax.random.normal(kx1, (batch, seq, embed_dim), jnp.float32)
    query_in = jax.random.normal(kx2, (batch, seq, embed_dim), jnp.float32)
    value_in = jax.random.normal(kx3, (batch, seq, embed_dim), jnp.float32)

    RTOL, ATOL = 1e-4, 1e-5   # exact softmax divide -> tight f32 tolerance

    # 1) cross-attention style call (distinct key/query/value -> unfused path).
    out = multi_head_attention(key_in, query_in, value_in, params, n_heads)
    out = jax.block_until_ready(out)
    ref = reference_mha(key_in, query_in, value_in, params, n_heads)
    np.testing.assert_allclose(np.asarray(out), np.asarray(ref), rtol=RTOL, atol=ATOL)

    # 2) self-attention call: fused QKV projection + fused attention input.
    out_sa = multi_head_attention(key_in, key_in, key_in, params, n_heads,
                                  fuse_qkv=True)
    out_sa = jax.block_until_ready(out_sa)
    ref_sa = reference_mha(key_in, key_in, key_in, params, n_heads)
    np.testing.assert_allclose(np.asarray(out_sa), np.asarray(ref_sa),
                               rtol=RTOL, atol=ATOL)

    print("KERNEL_OK")
</pallas_src>

<mosaic_0001>
module attributes {stable_mosaic.version = 11 : i64} {
  func.func @_matmul_resident_kernel(%arg0: i32, %arg1: memref<16x128xf32, #tpu.memory_space<vmem>>, %arg2: memref<128x128xf32, #tpu.memory_space<vmem>>, %arg3: memref<16x128xf32, #tpu.memory_space<vmem>>) attributes {dimension_semantics = [#tpu.dimension_semantics<parallel>], iteration_bounds = array<i64: 1>, scalar_prefetch = 0 : i64, scratch_operands = 0 : i64, tpu.core_type = #tpu.core_type<tc>, window_params = [{transform_indices = @transform_0, window_bounds = array<i64: 16, 128>}, {pipeline_mode = #tpu.pipeline_mode<synchronous>, transform_indices = @transform_1, window_bounds = array<i64: 128, 128>}, {transform_indices = @transform_2, window_bounds = array<i64: 16, 128>}]} {
    %c0 = arith.constant 0 : index
    %c0_0 = arith.constant 0 : index
    %0 = vector.load %arg1[%c0, %c0_0] : memref<16x128xf32, #tpu.memory_space<vmem>>, vector<16x128xf32>
    %c0_1 = arith.constant 0 : index
    %c0_2 = arith.constant 0 : index
    %1 = vector.load %arg2[%c0_1, %c0_2] : memref<128x128xf32, #tpu.memory_space<vmem>>, vector<128x128xf32>
    %cst = arith.constant dense<0.000000e+00> : vector<16x128xf32>
    %2 = tpu.matmul %0, %1, %cst {dimension_numbers = #tpu.dot_dimension_numbers<[1], [0], [0], [1], [0, 0, 1, 1], [], []>} : vector<16x128xf32>, vector<128x128xf32>, vector<16x128xf32> -> vector<16x128xf32>
    %c0_3 = arith.constant 0 : index
    %c0_4 = arith.constant 0 : index
    %3 = vector.load %arg3[%c0_3, %c0_4] : memref<16x128xf32, #tpu.memory_space<vmem>>, vector<16x128xf32>
    tpu.vector_store %arg3[%c0_3, %c0_4], %2 {strides = array<i32>} : memref<16x128xf32, #tpu.memory_space<vmem>>, vector<16x128xf32>,
    return
  }
  func.func @transform_0(%arg0: i32) -> (i32, i32) {
    %c0_i32 = arith.constant 0 : i32
    %c0_i32_0 = arith.constant 0 : i32
    return %arg0, %c0_i32 : i32, i32
  }
  func.func @transform_1(%arg0: i32) -> (i32, i32) {
    %c0_i32 = arith.constant 0 : i32
    %c0_i32_0 = arith.constant 0 : i32
    %c0_i32_1 = arith.constant 0 : i32
    return %c0_i32, %c0_i32_0 : i32, i32
  }
  func.func @transform_2(%arg0: i32) -> (i32, i32) {
    %c0_i32 = arith.constant 0 : i32
    %c0_i32_0 = arith.constant 0 : i32
    return %arg0, %c0_i32 : i32, i32
  }
}

</mosaic_0001>

<bundles_post_ra>
// kernel: tpu_custom_call.1
= control target key start
LH: loop header
LB: loop body
LE: loop exit
PB: predicated region body
PF: predicated region fallthrough
CT: control target
= control target key end

     0   :  { %7 = vsyncpa [#allocation3], 0  ;;  %s380_s0 = inlined_call_operand.hbm [shape: f32[16,128], index: 0, kind: input, shape index: {}]   ;;  %s381_s1 = inlined_call_operand.hbm [shape: f32[128,128], index: 1, kind: input, shape index: {}]   ;;  %s382_s2 = inlined_call_operand.hbm [shape: f32[16,128], index: 2, kind: output, shape index: {}]  }
   0x1   :  { %8 = vsyncpa [#allocation6], 0 }
   0x2   :  { %9 = vsyncpa [#allocation4], 0  ;;  %s315_s9 = smov [#allocation2]   ;;  %s243_s13 = scalar_lea.hbm %s380_s0, 256 }
   0x3   :  { %s15_s10 = sshll.u32 %s315_s9, 4  ;;  %p244_p0 = scmp.ne.s32.totalorder %s380_s0, %s243_s13  ;;  %s16_s10 = int_to_ptr.vmem [resolvable:$true] %s15_s10 }
   0x4   :  { %p247_p1 = scmp.lt.u32.totalorder %s243_s13, %s380_s0 }
   0x6   :  { %p249_p2 = pnand %p247_p1, %p244_p0 }
   0x8   :  { %252 = shalt.err (!%p249_p2)
}
   0x9   :  { %s253_s18 = scalar_lea.vmem %s16_s10, 256  ;;  %p258_p4 = scmp.lt.s32.totalorder %s16_s10, %s16_s10 }
   0xa   :  { %p254_p3 = scmp.ne.s32.totalorder %s16_s10, %s253_s18  ;;  %p259_p5 = scmp.lt.s32.totalorder %s253_s18, %s253_s18 }
   0xc   :  { %p260_p6 = por %p259_p5, %p258_p4 }
   0xe   :  { %p261_p7 = pnand %p260_p6, %p254_p3 }
  0x10   :  { %264 = shalt.err (!%p261_p7)
}
  0x11   :  { %s316_s19 = smov 128   ;;  %s317_s20 = smov 8  }
  0x12   :  { %21 = dma.hbm_to_vmem [thread:$0]  %s380_s0, 256, %s16_s10, [#allocation3], %s316_s19, %s316_s19, %s317_s20  }
  0x13   :  { %s318_s23 = smov [#allocation5]   ;;  %s265_s27 = scalar_lea.hbm %s381_s1, 2048 }
  0x14   :  { %s27_s24 = sshll.u32 %s318_s23, 4  ;;  %p266_p8 = scmp.ne.s32.totalorder %s381_s1, %s265_s27  ;;  %s28_s24 = int_to_ptr.vmem [resolvable:$true] %s27_s24 }
  0x15   :  { %p269_p9 = scmp.lt.u32.totalorder %s265_s27, %s381_s1 }
  0x17   :  { %p271_p10 = pnand %p269_p9, %p266_p8 }
  0x19   :  { %274 = shalt.err (!%p271_p10)
}
  0x1a   :  { %s275_s4 = scalar_lea.vmem %s28_s24, 2048  ;;  %p280_p12 = scmp.lt.s32.totalorder %s28_s24, %s28_s24 }
  0x1b   :  { %p276_p11 = scmp.ne.s32.totalorder %s28_s24, %s275_s4  ;;  %p281_p13 = scmp.lt.s32.totalorder %s275_s4, %s275_s4 }
  0x1d   :  { %p282_p0 = por %p281_p13, %p280_p12 }
  0x1f   :  { %p283_p1 = pnand %p282_p0, %p276_p11 }
  0x21   :  { %286 = shalt.err (!%p283_p1)
}
  0x22   :  { %33 = dma.hbm_to_vmem [thread:$0]  %s381_s1, 2048, %s28_s24, [#allocation6], %s316_s19, %s316_s19, %s317_s20  }
  0x23   :  { %309 = dma.done.wait [#allocation3], 256  }
  0x24   :  { %310 = vsyncadd [#allocation3], 4294967040 }
  0x25   :  { %311 = dma.done.wait [#allocation6], 2048  }
  0x26   :  { %312 = vsyncadd [#allocation6], 4294965248  ;;  %v42_v0 = vld [vmem:[#allocation5] sm:$0xff]  ;;  %v43_v1 = vld [vmem:[#allocation5 + $0x8] sm:$0xff]  ;;  %s319_s1 = smov [#allocation7]  }
  0x27   :  { %v44_v2 = vld [vmem:[#allocation5 + $0x10] sm:$0xff]  ;;  %v206_v3 = vpack.c.bf16 %v43_v1, %v42_v0  ;;  %v45_v4 = vld [vmem:[#allocation5 + $0x18] sm:$0xff]  ;;  %v46_v6 = vld [vmem:[#allocation5 + $0x20] sm:$0xff]  ;;  %s140_s6 = sshll.u32 %s319_s1, 4  ;;  %s141_s6 = int_to_ptr.vmem [resolvable:$true] %s140_s6 }
  0x28   :  { %v210_v5 = vpack.c.bf16 %v45_v4, %v44_v2  ;;  %v47_v7 = vld [vmem:[#allocation5 + $0x28] sm:$0xff]  ;;  %v40_v9 = vld [vmem:[#allocation2] sm:$0xff]  ;;  %v49_v11 = vld [vmem:[#allocation5 + $0x38] sm:$0xff]  ;;  %s287_s7 = scalar_lea.vmem %s141_s6, 256  ;;  %p292_p3 = scmp.lt.s32.totalorder %s141_s6, %s141_s6 }
  0x29   :  { %207 = vmatprep.subr.bf16.mxu0 %v206_v3  ;;  %v214_v8 = vpack.c.bf16 %v47_v7, %v46_v6  ;;  %v48_v10 = vld [vmem:[#allocation5 + $0x30] sm:$0xff]  ;;  %203 = vmatprep.mubr.f32.mxu0 %v40_v9  ;;  %v50_v13 = vld [vmem:[#allocation5 + $0x40] sm:$0xff]  ;;  %v51_v14 = vld [vmem:[#allocation5 + $0x48] sm:$0xff]  ;;  %p288_p2 = scmp.ne.s32.totalorder %s141_s6, %s287_s7  ;;  %p293_p4 = scmp.lt.s32.totalorder %s287_s7, %s287_s7 }
  0x2a   :  { %209 = vmatpush3.bf16.msra.mxu0 %v206_v3  ;;  %v218_v12 = vpack.c.bf16 %v49_v11, %v48_v10  ;;  %v222_v15 = vpack.c.bf16 %v51_v14, %v50_v13  ;;  %v52_v16 = vld [vmem:[#allocation5 + $0x50] sm:$0xff]  ;;  %v53_v17 = vld [vmem:[#allocation5 + $0x58] sm:$0xff]  ;;  %v54_v19 = vld [vmem:[#allocation5 + $0x60] sm:$0xff] }
  0x2b   :  { %211 = vmatprep.subr.bf16.mxu0 %v210_v5  ;;  %v226_v18 = vpack.c.bf16 %v53_v17, %v52_v16  ;;  %v55_v20 = vld [vmem:[#allocation5 + $0x68] sm:$0xff]  ;;  %v56_v22 = vld [vmem:[#allocation5 + $0x70] sm:$0xff]  ;;  %v57_v23 = vld [vmem:[#allocation5 + $0x78] sm:$0xff]  ;;  %p294_p5 = por %p293_p4, %p292_p3 }
  0x2c   :  { %v230_v21 = vpack.c.bf16 %v55_v20, %v54_v19  ;;  %v234_v24 = vpack.c.bf16 %v57_v23, %v56_v22  ;;  %v41_v25 = vld [vmem:[#allocation2 + $0x8] sm:$0xff] }
  0x2d   :  { %p295_p6 = pnand %p294_p5, %p288_p2 }
  0x2e   :  { %213 = vmatpush3.bf16.msra.mxu0 %v210_v5 }
  0x2f   :  { %215 = vmatprep.subr.bf16.mxu0 %v214_v8 }
  0x32   :  { %217 = vmatpush3.bf16.msra.mxu0 %v214_v8 }
  0x33   :  { %219 = vmatprep.subr.bf16.mxu0 %v218_v12 }
  0x36   :  { %221 = vmatpush3.bf16.msra.mxu0 %v218_v12 }
  0x37   :  { %223 = vmatprep.subr.bf16.mxu0 %v222_v15 }
  0x3a   :  { %225 = vmatpush3.bf16.msra.mxu0 %v222_v15 }
  0x3b   :  { %227 = vmatprep.subr.bf16.mxu0 %v226_v18 }
  0x3e   :  { %229 = vmatpush3.bf16.msra.mxu0 %v226_v18 }
  0x3f   :  { %231 = vmatprep.subr.bf16.mxu0 %v230_v21 }
  0x42   :  { %233 = vmatpush3.bf16.msra.mxu0 %v230_v21 }
  0x43   :  { %235 = vmatprep.subr.bf16.mxu0 %v234_v24 }
  0x46   :  { %237 = vmatpush3.bf16.msra.mxu0 %v234_v24 }
  0x49   :  { %204 = vmatmul.mubr.f32.vlgmr.msra.gmra.mrb[0].mxu0 %v41_v25 }
 0x11c   :  { %v205_v26 = vpop.f32.mrb[0].mxu0 }
 0x11d   :  { %134 = vst [vmem:[#allocation7 + $0x8] sm:$0xff] %v205_v26  ;;  %v124_v27 = vpop.f32.mrb[1].mxu0 }
 0x11e   :  { %133 = vst [vmem:[#allocation7] sm:$0xff] %v124_v27 }
 0x11f   :  { %298 = shalt.err (!%p295_p6)
}
 0x120   :  { %s299_s10 = scalar_lea.hbm %s382_s2, 256 }
 0x121   :  { %p300_p7 = scmp.ne.s32.totalorder %s382_s2, %s299_s10  ;;  %p303_p8 = scmp.lt.u32.totalorder %s299_s10, %s382_s2 }
 0x123   :  { %p305_p9 = pnand %p303_p8, %p300_p7 }
 0x125   :  { %308 = shalt.err (!%p305_p9)
}
 0x126   :  { %146 = dma.vmem_to_hbm [thread:$0]  %s141_s6, 256, %s382_s2, [#allocation4], %s316_s19, %s316_s19, %s317_s20  }
 0x127   :  { %313 = dma.done.wait [#allocation4], 256  }
 0x128   :  { %314 = vsyncadd [#allocation4], 4294967040 }
 0x129   :  { %150 = vsyncpa [#allocation3], 1 }
 0x12a   :  { %151 = vsyncpa [#allocation6], 1 }
 0x12b   :  { %152 = vsyncpa [#allocation4], 1 }

</bundles_post_ra>
